<compile_context>
chip_gen: v5e
topology: v5e:2x2
jax: 0.10.0
libtpu: 0.0.40
codegen_flags: <defaults>
</compile_context>

<pallas_src>
import functools

import jax
import jax.numpy as jnp
from jax import lax
from jax.experimental import pallas as pl
from jax.experimental.pallas import tpu as pltpu

GAMMA = 2.0  # module default


def _round_up(x, m):
    return (x + m - 1) // m * m


def _pick_tile_n(n, c, itemsize):
    """Row-tile size: big enough to approach the HBM roofline, small enough for
    double-buffered logits tiles to fit comfortably in v7x's scoped VMEM."""
    c_pad = _round_up(max(c, 1), 128)
    budget_bytes = 8 * 1024 * 1024          # per-stream budget (x2 for double buffer)
    tn = budget_bytes // (2 * c_pad * itemsize)
    tn = max(8, (tn // 8) * 8)
    tn = min(tn, 512)
    tn = min(tn, _round_up(n, 8))           # don't exceed the (padded) problem size
    return tn


def _focal_loss_kernel(logits_ref, targets_ref, alpha_ref, out_ref,
                       *, n_valid, tile_n, gamma):
    i = pl.program_id(0)

    x = logits_ref[...].astype(jnp.float32)        # (TN, C) upcast in-kernel
    tgt = targets_ref[...]                         # (TN, 1) int32
    alpha = alpha_ref[...].astype(jnp.float32)     # (1, C)

    tn, c = x.shape

    # In-kernel class-selection mask (replaces the materialized one-hot input).
    col = lax.broadcasted_iota(jnp.int32, (tn, c), 1)
    sel = col == tgt                               # (TN, C)

    # Numerically-stable log-softmax along the class (lane) axis.
    m = jnp.max(x, axis=-1, keepdims=True)         # (TN, 1)
    z = x - m
    lse = jnp.log(jnp.sum(jnp.exp(z), axis=-1, keepdims=True))
    logp = z - lse                                 # (TN, C)

    # Weighted cross-entropy per sample: -alpha[t] * log p_t
    ce = -jnp.sum(jnp.where(sel, alpha * logp, 0.0), axis=-1, keepdims=True)  # (TN, 1)

    pt = jnp.exp(-ce)
    one_minus_pt = 1.0 - pt
    if gamma == 2.0:
        mod = one_minus_pt * one_minus_pt          # VPU multiply, not EUP pow
    else:
        mod = one_minus_pt ** gamma
    focal = mod * ce                               # (TN, 1)

    # Mask padded tail rows (global row index >= N).
    row = lax.broadcasted_iota(jnp.int32, (tn, 1), 0) + i * tile_n
    focal = jnp.where(row < n_valid, focal, 0.0)

    tile_sum = jnp.sum(focal, axis=0, keepdims=True)   # (1, 1)

    @pl.when(i == 0)
    def _():
        out_ref[...] = jnp.zeros_like(out_ref)

    out_ref[...] += tile_sum


def focal_loss(logits, targets, alpha=None, gamma=GAMMA, reduction="mean"):
    """logits: (N, C) float (f32 or bf16); targets: (N,) int; alpha: (C,) or None."""
    n, c = logits.shape
    if alpha is None:
        alpha = jnp.ones((c,), jnp.float32)
    alpha2d = alpha.reshape(1, c).astype(jnp.float32)

    itemsize = jnp.dtype(logits.dtype).itemsize
    tn = _pick_tile_n(n, c, itemsize)
    n_pad = _round_up(n, tn)
    num_tiles = n_pad // tn

    if n_pad != n:
        logits = jnp.pad(logits, ((0, n_pad - n), (0, 0)))
        targets = jnp.pad(targets, (0, n_pad - n))
    targets2d = targets.reshape(n_pad, 1).astype(jnp.int32)

    kernel = functools.partial(
        _focal_loss_kernel, n_valid=n, tile_n=tn, gamma=float(gamma))

    total = pl.pallas_call(
        kernel,
        out_shape=jax.ShapeDtypeStruct((1, 1), jnp.float32),
        grid=(num_tiles,),
        in_specs=[
            pl.BlockSpec((tn, c), lambda i: (i, 0)),   # logits tile
            pl.BlockSpec((tn, 1), lambda i: (i, 0)),   # targets tile (int32)
            pl.BlockSpec((1, c), lambda i: (0, 0)),    # alpha, resident
        ],
        out_specs=pl.BlockSpec((1, 1), lambda i: (0, 0)),   # resident accumulator
        compiler_params=pltpu.CompilerParams(
            dimension_semantics=("arbitrary",)),       # reduction axis
    )(logits, targets2d, alpha2d)

    total = total[0, 0]
    if reduction == "mean":
        return total / n
    elif reduction == "sum":
        return total
    else:
        # TODO(synk): reduction='none' (per-sample output) not implemented in this kernel.
        raise NotImplementedError("reduction='none' not supported by this kernel")


def _reference(logits, targets, alpha, gamma=GAMMA):
    # Pure-JAX reference mirroring torch.nn.functional.cross_entropy(weight=alpha).
    logp = jax.nn.log_softmax(logits.astype(jnp.float32), axis=-1)
    n = logits.shape[0]
    picked = logp[jnp.arange(n), targets]
    ce = -alpha[targets] * picked
    pt = jnp.exp(-ce)
    focal = (1.0 - pt) ** gamma * ce
    return jnp.mean(focal)


if __name__ == "__main__":
    key = jax.random.PRNGKey(0)
    k1, k2 = jax.random.split(key)

    N, C = 8, 16  # small shapes: 8 samples, 16 classes
    logits = jax.random.normal(k1, (N, C), dtype=jnp.float32)
    targets = jax.random.randint(k2, (N,), 0, C, dtype=jnp.int32)
    # Deterministic per-class alpha weights (shape (C,)).
    alpha = jnp.linspace(0.5, 1.5, C, dtype=jnp.float32)

    out = focal_loss(logits, targets, alpha)
    out = jax.block_until_ready(out)

    ref = _reference(logits, targets, alpha)
    assert jnp.allclose(out, ref, rtol=1e-5, atol=1e-6), (out, ref)

    print("KERNEL_OK")
</pallas_src>

<mosaic_0001>
module attributes {stable_mosaic.version = 11 : i64} {
  func.func @_focal_loss_kernel(%arg0: i32, %arg1: memref<8x16xf32, #tpu.memory_space<vmem>>, %arg2: memref<8x1xi32, #tpu.memory_space<vmem>>, %arg3: memref<1x16xf32, #tpu.memory_space<vmem>>, %arg4: memref<1x1xf32, #tpu.memory_space<vmem>>) attributes {dimension_semantics = [#tpu.dimension_semantics<arbitrary>], iteration_bounds = array<i64: 1>, scalar_prefetch = 0 : i64, scratch_operands = 0 : i64, tpu.core_type = #tpu.core_type<tc>, window_params = [{transform_indices = @transform_0, window_bounds = array<i64: 8, 16>}, {transform_indices = @transform_1, window_bounds = array<i64: 8, 1>}, {pipeline_mode = #tpu.pipeline_mode<synchronous>, transform_indices = @transform_2, window_bounds = array<i64: 1, 16>}, {pipeline_mode = #tpu.pipeline_mode<synchronous>, transform_indices = @transform_3, window_bounds = array<i64: 1, 1>}]} {
    %c0 = arith.constant 0 : index
    %c0_0 = arith.constant 0 : index
    %0 = vector.load %arg1[%c0, %c0_0] : memref<8x16xf32, #tpu.memory_space<vmem>>, vector<8x16xf32>
    %c0_1 = arith.constant 0 : index
    %c0_2 = arith.constant 0 : index
    %1 = vector.load %arg2[%c0_1, %c0_2] : memref<8x1xi32, #tpu.memory_space<vmem>>, vector<8x1xi32>
    %c0_3 = arith.constant 0 : index
    %c0_4 = arith.constant 0 : index
    %2 = vector.load %arg3[%c0_3, %c0_4] : memref<1x16xf32, #tpu.memory_space<vmem>>, vector<1x16xf32>
    %3 = tpu.iota {dimensions = array<i32: 1>} : vector<8x16xi32>
    %4 = vector.broadcast %1 : vector<8x1xi32> to vector<8x16xi32>
    %5 = arith.cmpi eq, %3, %4 : vector<8x16xi32>
    %cst = arith.constant dense<0xFF800000> : vector<8xf32>
    %6 = vector.multi_reduction <maximumf>, %0, %cst [1] : vector<8x16xf32> to vector<8xf32>
    %7 = vector.shape_cast %6 : vector<8xf32> to vector<8x1xf32>
    %8 = vector.broadcast %7 : vector<8x1xf32> to vector<8x16xf32>
    %9 = arith.subf %0, %8 : vector<8x16xf32>
    %10 = math.exp %9 : vector<8x16xf32>
    %cst_5 = arith.constant dense<0.000000e+00> : vector<8xf32>
    %11 = vector.multi_reduction <add>, %10, %cst_5 [1] : vector<8x16xf32> to vector<8xf32>
    %12 = vector.shape_cast %11 : vector<8xf32> to vector<8x1xf32>
    %13 = math.log %12 : vector<8x1xf32>
    %14 = vector.broadcast %13 : vector<8x1xf32> to vector<8x16xf32>
    %15 = arith.subf %9, %14 : vector<8x16xf32>
    %16 = vector.broadcast %2 : vector<1x16xf32> to vector<8x16xf32>
    %17 = arith.mulf %16, %15 : vector<8x16xf32>
    %cst_6 = arith.constant 0.000000e+00 : f32
    %18 = vector.broadcast %cst_6 : f32 to vector<8x16xf32>
    %19 = arith.select %5, %17, %18 : vector<8x16xi1>, vector<8x16xf32>
    %cst_7 = arith.constant dense<0.000000e+00> : vector<8xf32>
    %20 = vector.multi_reduction <add>, %19, %cst_7 [1] : vector<8x16xf32> to vector<8xf32>
    %21 = vector.shape_cast %20 : vector<8xf32> to vector<8x1xf32>
    %cst_8 = arith.constant 0.000000e+00 : f32
    %22 = vector.broadcast %cst_8 : f32 to vector<8x1xf32>
    %23 = arith.subf %22, %21 : vector<8x1xf32>
    %cst_9 = arith.constant 0.000000e+00 : f32
    %24 = vector.broadcast %cst_9 : f32 to vector<8x1xf32>
    %25 = arith.subf %24, %23 : vector<8x1xf32>
    %26 = math.exp %25 : vector<8x1xf32>
    %cst_10 = arith.constant 1.000000e+00 : f32
    %27 = vector.broadcast %cst_10 : f32 to vector<8x1xf32>
    %28 = arith.subf %27, %26 : vector<8x1xf32>
    %29 = arith.mulf %28, %28 : vector<8x1xf32>
    %30 = arith.mulf %29, %23 : vector<8x1xf32>
    %31 = tpu.iota {dimensions = array<i32: 0>} : vector<8x1xi32>
    %c8_i32 = arith.constant 8 : i32
    %32 = arith.muli %arg0, %c8_i32 : i32
    %33 = vector.broadcast %32 : i32 to vector<8x1xi32>
    %34 = arith.addi %31, %33 : vector<8x1xi32>
    %c8_i32_11 = arith.constant 8 : i32
    %35 = vector.broadcast %c8_i32_11 : i32 to vector<8x1xi32>
    %36 = arith.cmpi slt, %34, %35 : vector<8x1xi32>
    %cst_12 = arith.constant 0.000000e+00 : f32
    %37 = vector.broadcast %cst_12 : f32 to vector<8x1xf32>
    %38 = arith.select %36, %30, %37 : vector<8x1xi1>, vector<8x1xf32>
    %cst_13 = arith.constant dense<0.000000e+00> : vector<1xf32>
    %39 = vector.multi_reduction <add>, %38, %cst_13 [0] : vector<8x1xf32> to vector<1xf32>
    %40 = vector.shape_cast %39 : vector<1xf32> to vector<1x1xf32>
    %c0_i32 = arith.constant 0 : i32
    %41 = arith.cmpi eq, %arg0, %c0_i32 : i32
    %42 = arith.extui %41 : i1 to i32
    %c0_i32_14 = arith.constant 0 : i32
    %43 = arith.cmpi ne, %42, %c0_i32_14 : i32
    scf.if %43 {
      %cst_19 = arith.constant 0.000000e+00 : f32
      %47 = vector.broadcast %cst_19 : f32 to vector<1x1xf32>
      %c0_20 = arith.constant 0 : index
      %c0_21 = arith.constant 0 : index
      %48 = vector.load %arg4[%c0_20, %c0_21] : memref<1x1xf32, #tpu.memory_space<vmem>>, vector<1x1xf32>
      tpu.vector_store %arg4[%c0_20, %c0_21], %47 {strides = array<i32>} : memref<1x1xf32, #tpu.memory_space<vmem>>, vector<1x1xf32>,
    } else {
    }
    %c0_15 = arith.constant 0 : index
    %c0_16 = arith.constant 0 : index
    %44 = vector.load %arg4[%c0_15, %c0_16] : memref<1x1xf32, #tpu.memory_space<vmem>>, vector<1x1xf32>
    %45 = arith.addf %44, %40 : vector<1x1xf32>
    %c0_17 = arith.constant 0 : index
    %c0_18 = arith.constant 0 : index
    %46 = vector.load %arg4[%c0_17, %c0_18] : memref<1x1xf32, #tpu.memory_space<vmem>>, vector<1x1xf32>
    tpu.vector_store %arg4[%c0_17, %c0_18], %45 {strides = array<i32>} : memref<1x1xf32, #tpu.memory_space<vmem>>, vector<1x1xf32>,
    return
  }
  func.func @transform_0(%arg0: i32) -> (i32, i32) {
    %c0_i32 = arith.constant 0 : i32
    %c0_i32_0 = arith.constant 0 : i32
    return %arg0, %c0_i32 : i32, i32
  }
  func.func @transform_1(%arg0: i32) -> (i32, i32) {
    %c0_i32 = arith.constant 0 : i32
    %c0_i32_0 = arith.constant 0 : i32
    return %arg0, %c0_i32 : i32, i32
  }
  func.func @transform_2(%arg0: i32) -> (i32, i32) {
    %c0_i32 = arith.constant 0 : i32
    %c0_i32_0 = arith.constant 0 : i32
    %c0_i32_1 = arith.constant 0 : i32
    return %c0_i32, %c0_i32_0 : i32, i32
  }
  func.func @transform_3(%arg0: i32) -> (i32, i32) {
    %c0_i32 = arith.constant 0 : i32
    %c0_i32_0 = arith.constant 0 : i32
    %c0_i32_1 = arith.constant 0 : i32
    return %c0_i32, %c0_i32_0 : i32, i32
  }
}

</mosaic_0001>

<bundles_post_ra>
// kernel: tpu_custom_call.1
= control target key start
LH: loop header
LB: loop body
LE: loop exit
PB: predicated region body
PF: predicated region fallthrough
CT: control target
= control target key end

     0   :  { %vm24_vm0 = vcmask 130048   ;;  %s169_s0 = inlined_call_operand.vmem [shape: f32[8,16], index: 0, kind: input, shape index: {}]   ;;  %s170_s1 = inlined_call_operand.vmem [shape: s32[8,1], index: 1, kind: input, shape index: {}]   ;;  %s171_s2 = inlined_call_operand.vmem [shape: f32[1,16], index: 2, kind: input, shape index: {}]   ;;  %s172_s3 = inlined_call_operand.hbm [shape: f32[1,1], index: 3, kind: output, shape index: {}]  }
   0x1   :  { %v15_v0 = vld [vmem:[%s169_s0] sm:$0xff] }
   0x2   :  { %8 = vsyncpa [#allocation3], 0  ;;  %v25_v1 = vsel %vm24_vm0, %v15_v0, -inf  ;;  %v16_v2 = vld [vmem:[%s170_s1] sm:$0xff]  ;;  %v129_v3 = vmov 0   ;;  %v18_v10 = vlaneseq  ;;  %vm69_vm2 = vcmask 0  }
   0x3   :  { %26 = vmax.xlane.f32.xlu0 %v25_v1  ;;  %94 = vset.pattern.permute.xlu1 %v129_v3  ;;  %v96_v15 = vld [vmem:[%s171_s2] ss:$0 sm:$0xff]  ;;  %v130_v20 = vmov 0.0   ;;  %s131_s2 = smov [#allocation2]   ;;  %s82_s19 = sshll.u32 %s172_s3, 4  ;;  %s83_s19 = int_to_ptr.hbm [resolvable:$true] %s82_s19 }
   0x4   :  { %95 = vset.pattern.permute.xlu0 %v129_v3  ;;  %21 = vperm.xlu1 %94, %v16_v2   ;;  %v19_v12 = vand.u32 127, %v18_v10  ;;  %70 = vst.msk [vmem:[#allocation2] sm:$0x1] %vm69_vm2, %v130_v20  ;;  %s80_s16 = sshll.u32 %s131_s2, 4  ;;  %s81_s16 = int_to_ptr.vmem [resolvable:$true] %s80_s16 }
   0xb   :  { %v71_v34 = vld [vmem:[#allocation2] sm:$0x1] }
  0x76   :  { %v27_v4 = vpop.xlane.xlu0 %26  ;;  %v22_v14 = vpop.permute.xlu1 %21 }
  0x77   :  { %v28_v5 = vsub.f32 %v15_v0, %v27_v4  ;;  %vm23_vm1 = vcmp.eq.s32.totalorder %v19_v12, %v22_v14 }
  0x79   :  { %v29_v6 = vmul.f32 1.442695, %v28_v5 }
  0x7b   :  { %97 = vpow2.f32 %v29_v6 }
  0x81   :  { %v98_v7 = vpop.eup %97 }
  0x82   :  { %v31_v8 = vsel %vm24_vm0, %v98_v7, 0.0 }
  0x83   :  { %32 = vadd.xlane.f32.xlu0 %v31_v8 }
  0xf6   :  { %v33_v9 = vpop.xlane.xlu0 %32 }
  0xf7   :  { %99 = vlog2.f32 %v33_v9 }
  0xfd   :  { %v100_v11 = vpop.eup %99 }
  0xfe   :  { %v35_v13 = vmul.f32 0.6931472, %v100_v11 }
 0x100   :  { %v36_v16 = vsub.f32 %v28_v5, %v35_v13 }
 0x102   :  { %v40_v17 = vmul.f32 %v96_v15, %v36_v16 }
 0x104   :  { %v41_v18 = vsel %vm23_vm1, %v40_v17, 0.0 }
 0x105   :  { %v42_v19 = vsel %vm24_vm0, %v41_v18, 0.0 }
 0x106   :  { %43 = vadd.xlane.f32.xlu1 %v42_v19 }
 0x179   :  { %v44_v21 = vpop.xlane.xlu1 %43 }
 0x17a   :  { %v45_v22 = vsub.f32 0.0, %v44_v21 }
 0x17c   :  { %v46_v23 = vsub.f32 0.0, %v45_v22 }
 0x17e   :  { %v47_v24 = vmul.f32 1.442695, %v46_v23 }
 0x180   :  { %101 = vpow2.f32 %v47_v24 }
 0x186   :  { %v102_v25 = vpop.eup %101 }
 0x187   :  { %v49_v26 = vsub.f32 1.0, %v102_v25 }
 0x189   :  { %v50_v27 = vmul.f32 %v49_v26, %v49_v26 }
 0x18b   :  { %v51_v28 = vmul.f32 %v50_v27, %v45_v22 }
 0x18d   :  { %v59_v29 = vrot.slane %v51_v28, 4 }
 0x18f   :  { %v60_v30 = vadd.f32 %v59_v29, %v51_v28 }
 0x191   :  { %v61_v31 = vrot.slane %v60_v30, 2 }
 0x193   :  { %v62_v32 = vadd.f32 %v61_v31, %v60_v30 }
 0x195   :  { %v63_v33 = vrot.slane %v62_v32, 1 }
 0x197   :  { %v64_v35 = vadd.f32 %v63_v33, %v62_v32 }
 0x199   :  { %v72_v36 = vadd.f32 %v71_v34, %v64_v35 }
 0x19b   :  { %74 = vst.msk [vmem:[#allocation2] sm:$0x1] %vm69_vm2, %v72_v36 }
 0x19c   :  { %85 = dma.vmem_to_hbm [thread:$0]  %s81_s16, 16, %s83_s19, [#allocation3]  }
 0x19d   :  { %127 = dma.done.wait [#allocation3], 16  }
 0x19e   :  { %128 = vsyncadd [#allocation3], 4294967280 }
 0x19f   :  { %90 = vsyncpa [#allocation3], 1 }

</bundles_post_ra>
